<compile_context>
chip_gen: v7x
topology: tpu7x:2x2x1
jax: 0.10.0
libtpu: 0.0.40
codegen_flags: <defaults>
</compile_context>

<pallas_src>
import functools

import jax
import jax.numpy as jnp
from jax import lax
from jax.experimental import pallas as pl
from jax.experimental.pallas import tpu as pltpu

EPS = 1e-5


def _label_predictor_kernel(
    x_ref,                      # (block_n, 256) bf16
    w1_ref, g1_ref, be1_ref,    # (256,128) bf16, (1,128) f32, (1,128) f32
    w2_ref, g2_ref, be2_ref,    # (128, 64) bf16, (1, 64) f32, (1, 64) f32
    w3_ref, b3_ref,             # ( 64,  2) bf16, (1,  2) f32
    o_ref,                      # (block_n, 2) f32
    sum1, sq1, s1, t1,          # (1,128) f32 scratch
    sum2, sq2, s2, t2,          # (1, 64) f32 scratch
    *caches,                    # cached: (T,block_n,128) bf16, (T,block_n,64) bf16
    n_actual, block_n, padded, cached,
):
    phase = pl.program_id(0)
    tile = pl.program_id(1)
    last_tile = pl.num_programs(1) - 1
    inv_n = 1.0 / float(n_actual)

    if cached:
        h1_cache, h2_cache = caches

    # Validity mask for padded tail rows.  Only BN2 statistics need it: padded
    # x rows are exact zeros (and b1 is dropped) so h1 == 0 there, but
    # relu(0*s1 + t1) is generally nonzero, so h2 of padded rows must be masked.
    if padded:
        row = tile * block_n + lax.broadcasted_iota(jnp.int32, (block_n, 1), 0)
        maskf = (row < n_actual).astype(jnp.float32)
    else:
        maskf = None

    def compute_h1():
        # bias b1 omitted: cancelled exactly by training-mode BN mean subtraction.
        return jnp.dot(x_ref[...], w1_ref[...], preferred_element_type=jnp.float32)

    def load_h1():
        if cached:
            return h1_cache[tile].astype(jnp.float32)
        return compute_h1()

    def compute_h2(h1):
        a1 = jnp.maximum(h1 * s1[...] + t1[...], 0.0)        # BN1 (folded) + ReLU
        return jnp.dot(a1.astype(jnp.bfloat16), w2_ref[...],
                       preferred_element_type=jnp.float32)

    def load_h2():
        if cached:
            return h2_cache[tile].astype(jnp.float32)
        return compute_h2(load_h1())

    def finalize(sum_ref, sq_ref, g_ref, be_ref, s_ref, t_ref):
        mu = sum_ref[...] * inv_n
        # One-pass biased variance; clamp (can cancel slightly negative).
        var = jnp.maximum(sq_ref[...] * inv_n - mu * mu, 0.0)
        s = g_ref[...] * lax.rsqrt(var + EPS)                 # rsqrt -> EUP slot
        s_ref[...] = s
        t_ref[...] = be_ref[...] - mu * s

    # ---- phase 0: h1 = x @ W1, accumulate BN1 stats, cache h1 (bf16) ----
    @pl.when(phase == 0)
    def _():
        @pl.when(tile == 0)
        def _():
            sum1[...] = jnp.zeros_like(sum1)
            sq1[...] = jnp.zeros_like(sq1)

        h1 = compute_h1()
        if cached:
            h1_cache[tile] = h1.astype(jnp.bfloat16)
        # No mask needed: padded x rows are exact zeros -> h1 rows are zeros.
        sum1[...] += jnp.sum(h1, axis=0, keepdims=True)
        sq1[...] += jnp.sum(h1 * h1, axis=0, keepdims=True)

        @pl.when(tile == last_tile)
        def _():
            finalize(sum1, sq1, g1_ref, be1_ref, s1, t1)

    # ---- phase 1: h2 = relu(bn1(h1)) @ W2, accumulate BN2 stats, cache h2 ----
    @pl.when(phase == 1)
    def _():
        @pl.when(tile == 0)
        def _():
            sum2[...] = jnp.zeros_like(sum2)
            sq2[...] = jnp.zeros_like(sq2)

        h2 = compute_h2(load_h1())
        if cached:
            h2_cache[tile] = h2.astype(jnp.bfloat16)
        h = h2 if maskf is None else h2 * maskf
        sum2[...] += jnp.sum(h, axis=0, keepdims=True)
        sq2[...] += jnp.sum(h * h, axis=0, keepdims=True)

        @pl.when(tile == last_tile)
        def _():
            finalize(sum2, sq2, g2_ref, be2_ref, s2, t2)

    # ---- phase 2: logits = relu(bn2(h2)) @ W3 + b3 ----
    @pl.when(phase == 2)
    def _():
        a2 = jnp.maximum(load_h2() * s2[...] + t2[...], 0.0)
        # (N,64)@(64,2) is lane-sparse but tiny; the 2-wide f32 output keeps
        # HBM write traffic minimal (MXU is idle-waiting on memory anyway).
        out = jnp.dot(a2.astype(jnp.bfloat16), w3_ref[...],
                      preferred_element_type=jnp.float32) + b3_ref[...]
        o_ref[...] = out.astype(o_ref.dtype)


def _vmem_capacity_bytes():
    try:
        return int(pltpu.get_tpu_info().vmem_capacity_bytes)
    except Exception:
        return 64 * 1024 * 1024      # conservative default = v7x (smallest VMEM)


def _pick_block_n(n, max_block):
    """Largest power-of-two tile >= 16 rows (bf16 (16,128) minimum tile) that
    does not exceed max_block or the 16-rounded batch size."""
    n16 = max(16, ((n + 15) // 16) * 16)
    limit = max(16, min(n16, max_block))
    b = 16
    while b * 2 <= limit:
        b *= 2
    return b


def label_predictor_forward(x, params, *, block_n=None):
    """x: (N, 256) float32. params: dict from init_params. Returns (N, 2) f32."""
    n, f_in = x.shape
    assert f_in == 256

    # VMEM budgeting (generation-aware: v7x reports 64 MiB, v5e/v6e 128 MiB).
    cap = _vmem_capacity_bytes()
    vmem_limit = min((cap * 3) // 4, 100 * 1024 * 1024)
    budget = vmem_limit - (4 << 20)                      # compiler headroom

    # Activation caches: bf16 h1 (256 B/row) + bf16 h2 lane-padded to 128
    # lanes (256 B/row) => ~512 B/row of VMEM.
    n16 = max(16, ((n + 15) // 16) * 16)
    cache_bytes_est = n16 * 512
    cached = cache_bytes_est <= budget - (8 << 20)
    # TODO(synk): for N too large for VMEM-resident caches, spill them to HBM
    # scratch via pltpu.make_async_copy instead of recomputing from x.

    if block_n is None:
        avail = budget - (cache_bytes_est if cached else 0) - (2 << 20)
        max_block = max(16, min(8192, avail // 4096))    # ~4 KiB VMEM per row of tile
        block_n = _pick_block_n(n, max_block)
    block_n = max(16, ((block_n + 15) // 16) * 16)       # bf16 sublane packing floor

    num_tiles = -(-n // block_n)
    n_pad = num_tiles * block_n
    if n_pad != n:
        x = jnp.pad(x, ((0, n_pad - n), (0, 0)))         # zero rows: h1 contribution is 0

    # bf16 on the matmul path only (halves HBM traffic for x; native MXU dtype).
    xb = x.astype(jnp.bfloat16)
    w1 = params["w1"].astype(jnp.bfloat16)
    w2 = params["w2"].astype(jnp.bfloat16)
    w3 = params["w3"].astype(jnp.bfloat16)
    # b1/b2 deliberately not passed: training-mode BN cancels them exactly.

    kernel = functools.partial(
        _label_predictor_kernel,
        n_actual=n, block_n=block_n, padded=(n_pad != n), cached=cached)

    const = lambda p, i: (0, 0)                          # weights/BN params stay resident
    if cached:
        # x is only needed during phase 0; pin it afterwards (no extra DMAs).
        x_map = lambda p, i: (jnp.where(p == 0, i, 0), 0)
    else:
        x_map = lambda p, i: (i, 0)
    # Output block only cycles during phase 2: no uninitialized writebacks.
    out_map = lambda p, i: (jnp.where(p == 2, i, 0), 0)

    scratch = ([pltpu.VMEM((1, 128), jnp.float32)] * 4 +     # sum/sq/scale/shift BN1
               [pltpu.VMEM((1, 64), jnp.float32)] * 4)       # sum/sq/scale/shift BN2
    if cached:
        scratch += [pltpu.VMEM((num_tiles, block_n, 128), jnp.bfloat16),  # h1 cache
                    pltpu.VMEM((num_tiles, block_n, 64), jnp.bfloat16)]   # h2 cache

    out = pl.pallas_call(
        kernel,
        out_shape=jax.ShapeDtypeStruct((n_pad, 2), jnp.float32),
        grid_spec=pltpu.PrefetchScalarGridSpec(
            num_scalar_prefetch=0,
            grid=(3, num_tiles),                         # (phase, batch tile)
            in_specs=[
                pl.BlockSpec((block_n, 256), x_map),     # x
                pl.BlockSpec((256, 128), const),         # w1
                pl.BlockSpec((1, 128), const),           # gamma1
                pl.BlockSpec((1, 128), const),           # beta1
                pl.BlockSpec((128, 64), const),          # w2
                pl.BlockSpec((1, 64), const),            # gamma2
                pl.BlockSpec((1, 64), const),            # beta2
                pl.BlockSpec((64, 2), const),            # w3
                pl.BlockSpec((1, 2), const),             # b3
            ],
            out_specs=pl.BlockSpec((block_n, 2), out_map),
            scratch_shapes=scratch,
        ),
        compiler_params=pltpu.CompilerParams(
            # Batch axis must stay "arbitrary": full-batch BN stats and the
            # activation caches live in per-core VMEM scratch.
            dimension_semantics=("arbitrary", "arbitrary"),
            vmem_limit_bytes=int(vmem_limit),
        ),
    )(xb, w1, params["g1"], params["be1"],
      w2, params["g2"], params["be2"],
      w3, params["b3"])

    return out[:n]


def init_params(key):
    """Deterministic synthetic parameters with the shapes implied by __init__."""
    ks = jax.random.split(key, 6)

    def lin(kw, kb, fan_in, fan_out):
        bound = 1.0 / jnp.sqrt(fan_in)
        w = jax.random.uniform(kw, (fan_in, fan_out), jnp.float32, -bound, bound)
        b = jax.random.uniform(kb, (1, fan_out), jnp.float32, -bound, bound)
        return w, b

    w1, b1 = lin(ks[0], ks[1], 256, 128)
    w2, b2 = lin(ks[2], ks[3], 128, 64)
    w3, b3 = lin(ks[4], ks[5], 64, 2)
    return {
        "w1": w1, "b1": b1,
        "g1": jnp.ones((1, 128), jnp.float32), "be1": jnp.zeros((1, 128), jnp.float32),
        "w2": w2, "b2": b2,
        "g2": jnp.ones((1, 64), jnp.float32), "be2": jnp.zeros((1, 64), jnp.float32),
        "w3": w3, "b3": b3,
    }


def _reference(x, p):
    """Pure-f32 JAX reference with exact PyTorch training-mode semantics."""
    def bn_relu(h, g, b):
        mu = jnp.mean(h, axis=0, keepdims=True)
        var = jnp.mean((h - mu) ** 2, axis=0, keepdims=True)
        return jnp.maximum((h - mu) / jnp.sqrt(var + EPS) * g + b, 0.0)

    h = bn_relu(x @ p["w1"] + p["b1"], p["g1"], p["be1"])
    h = bn_relu(h @ p["w2"] + p["b2"], p["g2"], p["be2"])
    return h @ p["w3"] + p["b3"]


if __name__ == "__main__":
    key = jax.random.PRNGKey(0)
    kx, kp = jax.random.split(key)

    # Small batch; multiple of 16 (bf16 sublane packing) but NOT a multiple of
    # the chosen 64-row tile, so the multi-tile + padded-tail + cached paths run.
    N = 96
    x = jax.random.normal(kx, (N, 256), jnp.float32)
    params = init_params(kp)

    out = jax.block_until_ready(label_predictor_forward(x, params))
    ref = _reference(x, params)

    assert out.shape == (N, 2), out.shape
    max_err = float(jnp.max(jnp.abs(out - ref)))
    assert jnp.allclose(out, ref, atol=5e-2, rtol=5e-2), f"mismatch vs reference, max_err={max_err}"

    print("KERNEL_OK")
</pallas_src>

<mosaic_0001>
module attributes {stable_mosaic.version = 11 : i64} {
  func.func @_label_predictor_kernel(%arg0: i32, %arg1: i32, %arg2: memref<64x256xbf16, #tpu.memory_space<vmem>>, %arg3: memref<256x128xbf16, #tpu.memory_space<vmem>>, %arg4: memref<1x128xf32, #tpu.memory_space<vmem>>, %arg5: memref<1x128xf32, #tpu.memory_space<vmem>>, %arg6: memref<128x64xbf16, #tpu.memory_space<vmem>>, %arg7: memref<1x64xf32, #tpu.memory_space<vmem>>, %arg8: memref<1x64xf32, #tpu.memory_space<vmem>>, %arg9: memref<64x2xbf16, #tpu.memory_space<vmem>>, %arg10: memref<1x2xf32, #tpu.memory_space<vmem>>, %arg11: memref<64x2xf32, #tpu.memory_space<vmem>>, %arg12: memref<1x128xf32, #tpu.memory_space<vmem>>, %arg13: memref<1x128xf32, #tpu.memory_space<vmem>>, %arg14: memref<1x128xf32, #tpu.memory_space<vmem>>, %arg15: memref<1x128xf32, #tpu.memory_space<vmem>>, %arg16: memref<1x64xf32, #tpu.memory_space<vmem>>, %arg17: memref<1x64xf32, #tpu.memory_space<vmem>>, %arg18: memref<1x64xf32, #tpu.memory_space<vmem>>, %arg19: memref<1x64xf32, #tpu.memory_space<vmem>>, %arg20: memref<2x64x128xbf16, #tpu.memory_space<vmem>>, %arg21: memref<2x64x64xbf16, #tpu.memory_space<vmem>>) attributes {dimension_semantics = [#tpu.dimension_semantics<arbitrary>, #tpu.dimension_semantics<arbitrary>], iteration_bounds = array<i64: 3, 2>, scalar_prefetch = 0 : i64, scratch_operands = 10 : i64, tpu.core_type = #tpu.core_type<tc>, window_params = [{transform_indices = @transform_0, window_bounds = array<i64: 64, 256>}, {pipeline_mode = #tpu.pipeline_mode<synchronous>, transform_indices = @transform_1, window_bounds = array<i64: 256, 128>}, {pipeline_mode = #tpu.pipeline_mode<synchronous>, transform_indices = @transform_2, window_bounds = array<i64: 1, 128>}, {pipeline_mode = #tpu.pipeline_mode<synchronous>, transform_indices = @transform_3, window_bounds = array<i64: 1, 128>}, {pipeline_mode = #tpu.pipeline_mode<synchronous>, transform_indices = @transform_4, window_bounds = array<i64: 128, 64>}, {pipeline_mode = #tpu.pipeline_mode<synchronous>, transform_indices = @transform_5, window_bounds = array<i64: 1, 64>}, {pipeline_mode = #tpu.pipeline_mode<synchronous>, transform_indices = @transform_6, window_bounds = array<i64: 1, 64>}, {pipeline_mode = #tpu.pipeline_mode<synchronous>, transform_indices = @transform_7, window_bounds = array<i64: 64, 2>}, {pipeline_mode = #tpu.pipeline_mode<synchronous>, transform_indices = @transform_8, window_bounds = array<i64: 1, 2>}, {transform_indices = @transform_9, window_bounds = array<i64: 64, 2>}]} {
    %c64_i32 = arith.constant 64 : i32
    %0 = arith.muli %arg1, %c64_i32 : i32
    %1 = tpu.iota {dimensions = array<i32: 0>} : vector<64x1xi32>
    %2 = vector.broadcast %0 : i32 to vector<64x1xi32>
    %3 = arith.addi %2, %1 : vector<64x1xi32>
    %c96_i32 = arith.constant 96 : i32
    %4 = vector.broadcast %c96_i32 : i32 to vector<64x1xi32>
    %5 = arith.cmpi slt, %3, %4 : vector<64x1xi32>
    %6 = arith.extui %5 : vector<64x1xi1> to vector<64x1xi32>
    %7 = arith.sitofp %6 : vector<64x1xi32> to vector<64x1xf32>
    %c0_i32 = arith.constant 0 : i32
    %8 = arith.cmpi eq, %arg0, %c0_i32 : i32
    %9 = arith.extui %8 : i1 to i32
    %c0_i32_0 = arith.constant 0 : i32
    %10 = arith.cmpi ne, %9, %c0_i32_0 : i32
    scf.if %10 {
      %c0_i32_3 = arith.constant 0 : i32
      %17 = arith.cmpi eq, %arg1, %c0_i32_3 : i32
      %18 = arith.extui %17 : i1 to i32
      %c0_i32_4 = arith.constant 0 : i32
      %19 = arith.cmpi ne, %18, %c0_i32_4 : i32
      scf.if %19 {
        %cst_22 = arith.constant 0.000000e+00 : f32
        %42 = vector.broadcast %cst_22 : f32 to vector<1x128xf32>
        %c0_23 = arith.constant 0 : index
        %c0_24 = arith.constant 0 : index
        %43 = vector.load %arg12[%c0_23, %c0_24] : memref<1x128xf32, #tpu.memory_space<vmem>>, vector<1x128xf32>
        tpu.vector_store %arg12[%c0_23, %c0_24], %42 {strides = array<i32>} : memref<1x128xf32, #tpu.memory_space<vmem>>, vector<1x128xf32>,
        %cst_25 = arith.constant 0.000000e+00 : f32
        %44 = vector.broadcast %cst_25 : f32 to vector<1x128xf32>
        %c0_26 = arith.constant 0 : index
        %c0_27 = arith.constant 0 : index
        %45 = vector.load %arg13[%c0_26, %c0_27] : memref<1x128xf32, #tpu.memory_space<vmem>>, vector<1x128xf32>
        tpu.vector_store %arg13[%c0_26, %c0_27], %44 {strides = array<i32>} : memref<1x128xf32, #tpu.memory_space<vmem>>, vector<1x128xf32>,
      } else {
      }
      %c0 = arith.constant 0 : index
      %c0_5 = arith.constant 0 : index
      %20 = vector.load %arg2[%c0, %c0_5] : memref<64x256xbf16, #tpu.memory_space<vmem>>, vector<64x256xbf16>
      %c0_6 = arith.constant 0 : index
      %c0_7 = arith.constant 0 : index
      %21 = vector.load %arg3[%c0_6, %c0_7] : memref<256x128xbf16, #tpu.memory_space<vmem>>, vector<256x128xbf16>
      %cst = arith.constant dense<0.000000e+00> : vector<64x128xf32>
      %22 = tpu.matmul %20, %21, %cst {dimension_numbers = #tpu.dot_dimension_numbers<[1], [0], [0], [1], [0, 0, 1, 1], [], []>} : vector<64x256xbf16>, vector<256x128xbf16>, vector<64x128xf32> -> vector<64x128xf32>
      %23 = arith.truncf %22 : vector<64x128xf32> to vector<64x128xbf16>
      %24 = arith.index_cast %arg1 : i32 to index
      %c0_8 = arith.constant 0 : index
      %c0_9 = arith.constant 0 : index
      %25 = vector.load %arg20[%24, %c0_8, %c0_9] : memref<2x64x128xbf16, #tpu.memory_space<vmem>>, vector<1x64x128xbf16>
      %26 = vector.shape_cast %25 : vector<1x64x128xbf16> to vector<64x128xbf16>
      %27 = vector.shape_cast %23 : vector<64x128xbf16> to vector<1x64x128xbf16>
      tpu.vector_store %arg20[%24, %c0_8, %c0_9], %27 {strides = array<i32>} : memref<2x64x128xbf16, #tpu.memory_space<vmem>>, vector<1x64x128xbf16>,
      %c0_10 = arith.constant 0 : index
      %c0_11 = arith.constant 0 : index
      %28 = vector.load %arg12[%c0_10, %c0_11] : memref<1x128xf32, #tpu.memory_space<vmem>>, vector<1x128xf32>
      %cst_12 = arith.constant dense<0.000000e+00> : vector<128xf32>
      %29 = vector.multi_reduction <add>, %22, %cst_12 [0] : vector<64x128xf32> to vector<128xf32>
      %30 = vector.shape_cast %29 : vector<128xf32> to vector<1x128xf32>
      %31 = arith.addf %28, %30 : vector<1x128xf32>
      %c0_13 = arith.constant 0 : index
      %c0_14 = arith.constant 0 : index
      %32 = vector.load %arg12[%c0_13, %c0_14] : memref<1x128xf32, #tpu.memory_space<vmem>>, vector<1x128xf32>
      tpu.vector_store %arg12[%c0_13, %c0_14], %31 {strides = array<i32>} : memref<1x128xf32, #tpu.memory_space<vmem>>, vector<1x128xf32>,
      %c0_15 = arith.constant 0 : index
      %c0_16 = arith.constant 0 : index
      %33 = vector.load %arg13[%c0_15, %c0_16] : memref<1x128xf32, #tpu.memory_space<vmem>>, vector<1x128xf32>
      %34 = arith.mulf %22, %22 : vector<64x128xf32>
      %cst_17 = arith.constant dense<0.000000e+00> : vector<128xf32>
      %35 = vector.multi_reduction <add>, %34, %cst_17 [0] : vector<64x128xf32> to vector<128xf32>
      %36 = vector.shape_cast %35 : vector<128xf32> to vector<1x128xf32>
      %37 = arith.addf %33, %36 : vector<1x128xf32>
      %c0_18 = arith.constant 0 : index
      %c0_19 = arith.constant 0 : index
      %38 = vector.load %arg13[%c0_18, %c0_19] : memref<1x128xf32, #tpu.memory_space<vmem>>, vector<1x128xf32>
      tpu.vector_store %arg13[%c0_18, %c0_19], %37 {strides = array<i32>} : memref<1x128xf32, #tpu.memory_space<vmem>>, vector<1x128xf32>,
      %c1_i32_20 = arith.constant 1 : i32
      %39 = arith.cmpi eq, %arg1, %c1_i32_20 : i32
      %40 = arith.extui %39 : i1 to i32
      %c0_i32_21 = arith.constant 0 : i32
      %41 = arith.cmpi ne, %40, %c0_i32_21 : i32
      scf.if %41 {
        %c0_22 = arith.constant 0 : index
        %c0_23 = arith.constant 0 : index
        %42 = vector.load %arg12[%c0_22, %c0_23] : memref<1x128xf32, #tpu.memory_space<vmem>>, vector<1x128xf32>
        %cst_24 = arith.constant 0.010416667 : f32
        %43 = vector.broadcast %cst_24 : f32 to vector<1x128xf32>
        %44 = arith.mulf %42, %43 : vector<1x128xf32>
        %c0_25 = arith.constant 0 : index
        %c0_26 = arith.constant 0 : index
        %45 = vector.load %arg13[%c0_25, %c0_26] : memref<1x128xf32, #tpu.memory_space<vmem>>, vector<1x128xf32>
        %cst_27 = arith.constant 0.010416667 : f32
        %46 = vector.broadcast %cst_27 : f32 to vector<1x128xf32>
        %47 = arith.mulf %45, %46 : vector<1x128xf32>
        %48 = arith.mulf %44, %44 : vector<1x128xf32>
        %49 = arith.subf %47, %48 : vector<1x128xf32>
        %cst_28 = arith.constant 0.000000e+00 : f32
        %50 = vector.broadcast %cst_28 : f32 to vector<1x128xf32>
        %51 = arith.maximumf %49, %50 : vector<1x128xf32>
        %c0_29 = arith.constant 0 : index
        %c0_30 = arith.constant 0 : index
        %52 = vector.load %arg4[%c0_29, %c0_30] : memref<1x128xf32, #tpu.memory_space<vmem>>, vector<1x128xf32>
        %cst_31 = arith.constant 9.99999974E-6 : f32
        %53 = vector.broadcast %cst_31 : f32 to vector<1x128xf32>
        %54 = arith.addf %51, %53 : vector<1x128xf32>
        %55 = math.rsqrt %54 : vector<1x128xf32>
        %56 = arith.mulf %52, %55 : vector<1x128xf32>
        %c0_32 = arith.constant 0 : index
        %c0_33 = arith.constant 0 : index
        %57 = vector.load %arg14[%c0_32, %c0_33] : memref<1x128xf32, #tpu.memory_space<vmem>>, vector<1x128xf32>
        tpu.vector_store %arg14[%c0_32, %c0_33], %56 {strides = array<i32>} : memref<1x128xf32, #tpu.memory_space<vmem>>, vector<1x128xf32>,
        %c0_34 = arith.constant 0 : index
        %c0_35 = arith.constant 0 : index
        %58 = vector.load %arg5[%c0_34, %c0_35] : memref<1x128xf32, #tpu.memory_space<vmem>>, vector<1x128xf32>
        %59 = arith.mulf %44, %56 : vector<1x128xf32>
        %60 = arith.subf %58, %59 : vector<1x128xf32>
        %c0_36 = arith.constant 0 : index
        %c0_37 = arith.constant 0 : index
        %61 = vector.load %arg15[%c0_36, %c0_37] : memref<1x128xf32, #tpu.memory_space<vmem>>, vector<1x128xf32>
        tpu.vector_store %arg15[%c0_36, %c0_37], %60 {strides = array<i32>} : memref<1x128xf32, #tpu.memory_space<vmem>>, vector<1x128xf32>,
      } else {
      }
    } else {
    }
    %c1_i32 = arith.constant 1 : i32
    %11 = arith.cmpi eq, %arg0, %c1_i32 : i32
    %12 = arith.extui %11 : i1 to i32
    %c0_i32_1 = arith.constant 0 : i32
    %13 = arith.cmpi ne, %12, %c0_i32_1 : i32
    scf.if %13 {
      %c0_i32_3 = arith.constant 0 : i32
      %17 = arith.cmpi eq, %arg1, %c0_i32_3 : i32
      %18 = arith.extui %17 : i1 to i32
      %c0_i32_4 = arith.constant 0 : i32
      %19 = arith.cmpi ne, %18, %c0_i32_4 : i32
      scf.if %19 {
        %cst_27 = arith.constant 0.000000e+00 : f32
        %56 = vector.broadcast %cst_27 : f32 to vector<1x64xf32>
        %c0_28 = arith.constant 0 : index
        %c0_29 = arith.constant 0 : index
        %57 = vector.load %arg16[%c0_28, %c0_29] : memref<1x64xf32, #tpu.memory_space<vmem>>, vector<1x64xf32>
        tpu.vector_store %arg16[%c0_28, %c0_29], %56 {strides = array<i32>} : memref<1x64xf32, #tpu.memory_space<vmem>>, vector<1x64xf32>,
        %cst_30 = arith.constant 0.000000e+00 : f32
        %58 = vector.broadcast %cst_30 : f32 to vector<1x64xf32>
        %c0_31 = arith.constant 0 : index
        %c0_32 = arith.constant 0 : index
        %59 = vector.load %arg17[%c0_31, %c0_32] : memref<1x64xf32, #tpu.memory_space<vmem>>, vector<1x64xf32>
        tpu.vector_store %arg17[%c0_31, %c0_32], %58 {strides = array<i32>} : memref<1x64xf32, #tpu.memory_space<vmem>>, vector<1x64xf32>,
      } else {
      }
      %20 = arith.index_cast %arg1 : i32 to index
      %c0 = arith.constant 0 : index
      %c0_5 = arith.constant 0 : index
      %21 = vector.load %arg20[%20, %c0, %c0_5] : memref<2x64x128xbf16, #tpu.memory_space<vmem>>, vector<1x64x128xbf16>
      %22 = vector.shape_cast %21 : vector<1x64x128xbf16> to vector<64x128xbf16>
      %23 = arith.extf %22 : vector<64x128xbf16> to vector<64x128xf32>
      %c0_6 = arith.constant 0 : index
      %c0_7 = arith.constant 0 : index
      %24 = vector.load %arg14[%c0_6, %c0_7] : memref<1x128xf32, #tpu.memory_space<vmem>>, vector<1x128xf32>
      %25 = vector.broadcast %24 : vector<1x128xf32> to vector<64x128xf32>
      %26 = arith.mulf %23, %25 : vector<64x128xf32>
      %c0_8 = arith.constant 0 : index
      %c0_9 = arith.constant 0 : index
      %27 = vector.load %arg15[%c0_8, %c0_9] : memref<1x128xf32, #tpu.memory_space<vmem>>, vector<1x128xf32>
      %28 = vector.broadcast %27 : vector<1x128xf32> to vector<64x128xf32>
      %29 = arith.addf %26, %28 : vector<64x128xf32>
      %cst = arith.constant 0.000000e+00 : f32
      %30 = vector.broadcast %cst : f32 to vector<64x128xf32>
      %31 = arith.maximumf %29, %30 : vector<64x128xf32>
      %32 = arith.truncf %31 : vector<64x128xf32> to vector<64x128xbf16>
      %c0_10 = arith.constant 0 : index
      %c0_11 = arith.constant 0 : index
      %33 = vector.load %arg6[%c0_10, %c0_11] : memref<128x64xbf16, #tpu.memory_space<vmem>>, vector<128x64xbf16>
      %cst_12 = arith.constant dense<0.000000e+00> : vector<64x64xf32>
      %34 = tpu.matmul %32, %33, %cst_12 {dimension_numbers = #tpu.dot_dimension_numbers<[1], [0], [0], [1], [0, 0, 1, 1], [], []>} : vector<64x128xbf16>, vector<128x64xbf16>, vector<64x64xf32> -> vector<64x64xf32>
      %35 = arith.truncf %34 : vector<64x64xf32> to vector<64x64xbf16>
      %36 = arith.index_cast %arg1 : i32 to index
      %c0_13 = arith.constant 0 : index
      %c0_14 = arith.constant 0 : index
      %37 = vector.load %arg21[%36, %c0_13, %c0_14] : memref<2x64x64xbf16, #tpu.memory_space<vmem>>, vector<1x64x64xbf16>
      %38 = vector.shape_cast %37 : vector<1x64x64xbf16> to vector<64x64xbf16>
      %39 = vector.shape_cast %35 : vector<64x64xbf16> to vector<1x64x64xbf16>
      tpu.vector_store %arg21[%36, %c0_13, %c0_14], %39 {strides = array<i32>} : memref<2x64x64xbf16, #tpu.memory_space<vmem>>, vector<1x64x64xbf16>,
      %40 = vector.broadcast %7 : vector<64x1xf32> to vector<64x64xf32>
      %41 = arith.mulf %34, %40 : vector<64x64xf32>
      %c0_15 = arith.constant 0 : index
      %c0_16 = arith.constant 0 : index
      %42 = vector.load %arg16[%c0_15, %c0_16] : memref<1x64xf32, #tpu.memory_space<vmem>>, vector<1x64xf32>
      %cst_17 = arith.constant dense<0.000000e+00> : vector<64xf32>
      %43 = vector.multi_reduction <add>, %41, %cst_17 [0] : vector<64x64xf32> to vector<64xf32>
      %44 = vector.shape_cast %43 : vector<64xf32> to vector<1x64xf32>
      %45 = arith.addf %42, %44 : vector<1x64xf32>
      %c0_18 = arith.constant 0 : index
      %c0_19 = arith.constant 0 : index
      %46 = vector.load %arg16[%c0_18, %c0_19] : memref<1x64xf32, #tpu.memory_space<vmem>>, vector<1x64xf32>
      tpu.vector_store %arg16[%c0_18, %c0_19], %45 {strides = array<i32>} : memref<1x64xf32, #tpu.memory_space<vmem>>, vector<1x64xf32>,
      %c0_20 = arith.constant 0 : index
      %c0_21 = arith.constant 0 : index
      %47 = vector.load %arg17[%c0_20, %c0_21] : memref<1x64xf32, #tpu.memory_space<vmem>>, vector<1x64xf32>
      %48 = arith.mulf %41, %41 : vector<64x64xf32>
      %cst_22 = arith.constant dense<0.000000e+00> : vector<64xf32>
      %49 = vector.multi_reduction <add>, %48, %cst_22 [0] : vector<64x64xf32> to vector<64xf32>
      %50 = vector.shape_cast %49 : vector<64xf32> to vector<1x64xf32>
      %51 = arith.addf %47, %50 : vector<1x64xf32>
      %c0_23 = arith.constant 0 : index
      %c0_24 = arith.constant 0 : index
      %52 = vector.load %arg17[%c0_23, %c0_24] : memref<1x64xf32, #tpu.memory_space<vmem>>, vector<1x64xf32>
      tpu.vector_store %arg17[%c0_23, %c0_24], %51 {strides = array<i32>} : memref<1x64xf32, #tpu.memory_space<vmem>>, vector<1x64xf32>,
      %c1_i32_25 = arith.constant 1 : i32
      %53 = arith.cmpi eq, %arg1, %c1_i32_25 : i32
      %54 = arith.extui %53 : i1 to i32
      %c0_i32_26 = arith.constant 0 : i32
      %55 = arith.cmpi ne, %54, %c0_i32_26 : i32
      scf.if %55 {
        %c0_27 = arith.constant 0 : index
        %c0_28 = arith.constant 0 : index
        %56 = vector.load %arg16[%c0_27, %c0_28] : memref<1x64xf32, #tpu.memory_space<vmem>>, vector<1x64xf32>
        %cst_29 = arith.constant 0.010416667 : f32
        %57 = vector.broadcast %cst_29 : f32 to vector<1x64xf32>
        %58 = arith.mulf %56, %57 : vector<1x64xf32>
        %c0_30 = arith.constant 0 : index
        %c0_31 = arith.constant 0 : index
        %59 = vector.load %arg17[%c0_30, %c0_31] : memref<1x64xf32, #tpu.memory_space<vmem>>, vector<1x64xf32>
        %cst_32 = arith.constant 0.010416667 : f32
        %60 = vector.broadcast %cst_32 : f32 to vector<1x64xf32>
        %61 = arith.mulf %59, %60 : vector<1x64xf32>
        %62 = arith.mulf %58, %58 : vector<1x64xf32>
        %63 = arith.subf %61, %62 : vector<1x64xf32>
        %cst_33 = arith.constant 0.000000e+00 : f32
        %64 = vector.broadcast %cst_33 : f32 to vector<1x64xf32>
        %65 = arith.maximumf %63, %64 : vector<1x64xf32>
        %c0_34 = arith.constant 0 : index
        %c0_35 = arith.constant 0 : index
        %66 = vector.load %arg7[%c0_34, %c0_35] : memref<1x64xf32, #tpu.memory_space<vmem>>, vector<1x64xf32>
        %cst_36 = arith.constant 9.99999974E-6 : f32
        %67 = vector.broadcast %cst_36 : f32 to vector<1x64xf32>
        %68 = arith.addf %65, %67 : vector<1x64xf32>
        %69 = math.rsqrt %68 : vector<1x64xf32>
        %70 = arith.mulf %66, %69 : vector<1x64xf32>
        %c0_37 = arith.constant 0 : index
        %c0_38 = arith.constant 0 : index
        %71 = vector.load %arg18[%c0_37, %c0_38] : memref<1x64xf32, #tpu.memory_space<vmem>>, vector<1x64xf32>
        tpu.vector_store %arg18[%c0_37, %c0_38], %70 {strides = array<i32>} : memref<1x64xf32, #tpu.memory_space<vmem>>, vector<1x64xf32>,
        %c0_39 = arith.constant 0 : index
        %c0_40 = arith.constant 0 : index
        %72 = vector.load %arg8[%c0_39, %c0_40] : memref<1x64xf32, #tpu.memory_space<vmem>>, vector<1x64xf32>
        %73 = arith.mulf %58, %70 : vector<1x64xf32>
        %74 = arith.subf %72, %73 : vector<1x64xf32>
        %c0_41 = arith.constant 0 : index
        %c0_42 = arith.constant 0 : index
        %75 = vector.load %arg19[%c0_41, %c0_42] : memref<1x64xf32, #tpu.memory_space<vmem>>, vector<1x64xf32>
        tpu.vector_store %arg19[%c0_41, %c0_42], %74 {strides = array<i32>} : memref<1x64xf32, #tpu.memory_space<vmem>>, vector<1x64xf32>,
      } else {
      }
    } else {
    }
    %c2_i32 = arith.constant 2 : i32
    %14 = arith.cmpi eq, %arg0, %c2_i32 : i32
    %15 = arith.extui %14 : i1 to i32
    %c0_i32_2 = arith.constant 0 : i32
    %16 = arith.cmpi ne, %15, %c0_i32_2 : i32
    scf.if %16 {
      %17 = arith.index_cast %arg1 : i32 to index
      %c0 = arith.constant 0 : index
      %c0_3 = arith.constant 0 : index
      %18 = vector.load %arg21[%17, %c0, %c0_3] : memref<2x64x64xbf16, #tpu.memory_space<vmem>>, vector<1x64x64xbf16>
      %19 = vector.shape_cast %18 : vector<1x64x64xbf16> to vector<64x64xbf16>
      %20 = arith.extf %19 : vector<64x64xbf16> to vector<64x64xf32>
      %c0_4 = arith.constant 0 : index
      %c0_5 = arith.constant 0 : index
      %21 = vector.load %arg18[%c0_4, %c0_5] : memref<1x64xf32, #tpu.memory_space<vmem>>, vector<1x64xf32>
      %22 = vector.broadcast %21 : vector<1x64xf32> to vector<64x64xf32>
      %23 = arith.mulf %20, %22 : vector<64x64xf32>
      %c0_6 = arith.constant 0 : index
      %c0_7 = arith.constant 0 : index
      %24 = vector.load %arg19[%c0_6, %c0_7] : memref<1x64xf32, #tpu.memory_space<vmem>>, vector<1x64xf32>
      %25 = vector.broadcast %24 : vector<1x64xf32> to vector<64x64xf32>
      %26 = arith.addf %23, %25 : vector<64x64xf32>
      %cst = arith.constant 0.000000e+00 : f32
      %27 = vector.broadcast %cst : f32 to vector<64x64xf32>
      %28 = arith.maximumf %26, %27 : vector<64x64xf32>
      %29 = arith.truncf %28 : vector<64x64xf32> to vector<64x64xbf16>
      %c0_8 = arith.constant 0 : index
      %c0_9 = arith.constant 0 : index
      %30 = vector.load %arg9[%c0_8, %c0_9] : memref<64x2xbf16, #tpu.memory_space<vmem>>, vector<64x2xbf16>
      %cst_10 = arith.constant dense<0.000000e+00> : vector<64x2xf32>
      %31 = tpu.matmul %29, %30, %cst_10 {dimension_numbers = #tpu.dot_dimension_numbers<[1], [0], [0], [1], [0, 0, 1, 1], [], []>} : vector<64x64xbf16>, vector<64x2xbf16>, vector<64x2xf32> -> vector<64x2xf32>
      %c0_11 = arith.constant 0 : index
      %c0_12 = arith.constant 0 : index
      %32 = vector.load %arg10[%c0_11, %c0_12] : memref<1x2xf32, #tpu.memory_space<vmem>>, vector<1x2xf32>
      %33 = vector.broadcast %32 : vector<1x2xf32> to vector<64x2xf32>
      %34 = arith.addf %31, %33 : vector<64x2xf32>
      %c0_13 = arith.constant 0 : index
      %c0_14 = arith.constant 0 : index
      %35 = vector.load %arg11[%c0_13, %c0_14] : memref<64x2xf32, #tpu.memory_space<vmem>>, vector<64x2xf32>
      tpu.vector_store %arg11[%c0_13, %c0_14], %34 {strides = array<i32>} : memref<64x2xf32, #tpu.memory_space<vmem>>, vector<64x2xf32>,
    } else {
    }
    return
  }
  func.func @transform_0(%arg0: i32, %arg1: i32) -> (i32, i32) {
    %c0_i32 = arith.constant 0 : i32
    %0 = arith.cmpi eq, %arg0, %c0_i32 : i32
    %c0_i32_0 = arith.constant 0 : i32
    %1 = arith.select %0, %arg1, %c0_i32_0 : i32
    %c0_i32_1 = arith.constant 0 : i32
    %c0_i32_2 = arith.constant 0 : i32
    return %1, %c0_i32_1 : i32, i32
  }
  func.func @transform_1(%arg0: i32, %arg1: i32) -> (i32, i32) {
    %c0_i32 = arith.constant 0 : i32
    %c0_i32_0 = arith.constant 0 : i32
    %c0_i32_1 = arith.constant 0 : i32
    return %c0_i32, %c0_i32_0 : i32, i32
  }
  func.func @transform_2(%arg0: i32, %arg1: i32) -> (i32, i32) {
    %c0_i32 = arith.constant 0 : i32
    %c0_i32_0 = arith.constant 0 : i32
    %c0_i32_1 = arith.constant 0 : i32
    return %c0_i32, %c0_i32_0 : i32, i32
  }
  func.func @transform_3(%arg0: i32, %arg1: i32) -> (i32, i32) {
    %c0_i32 = arith.constant 0 : i32
    %c0_i32_0 = arith.constant 0 : i32
    %c0_i32_1 = arith.constant 0 : i32
    return %c0_i32, %c0_i32_0 : i32, i32
  }
  func.func @transform_4(%arg0: i32, %arg1: i32) -> (i32, i32) {
    %c0_i32 = arith.constant 0 : i32
    %c0_i32_0 = arith.constant 0 : i32
    %c0_i32_1 = arith.constant 0 : i32
    return %c0_i32, %c0_i32_0 : i32, i32
  }
  func.func @transform_5(%arg0: i32, %arg1: i32) -> (i32, i32) {
    %c0_i32 = arith.constant 0 : i32
    %c0_i32_0 = arith.constant 0 : i32
    %c0_i32_1 = arith.constant 0 : i32
    return %c0_i32, %c0_i32_0 : i32, i32
  }
  func.func @transform_6(%arg0: i32, %arg1: i32) -> (i32, i32) {
    %c0_i32 = arith.constant 0 : i32
    %c0_i32_0 = arith.constant 0 : i32
    %c0_i32_1 = arith.constant 0 : i32
    return %c0_i32, %c0_i32_0 : i32, i32
  }
  func.func @transform_7(%arg0: i32, %arg1: i32) -> (i32, i32) {
    %c0_i32 = arith.constant 0 : i32
    %c0_i32_0 = arith.constant 0 : i32
    %c0_i32_1 = arith.constant 0 : i32
    return %c0_i32, %c0_i32_0 : i32, i32
  }
  func.func @transform_8(%arg0: i32, %arg1: i32) -> (i32, i32) {
    %c0_i32 = arith.constant 0 : i32
    %c0_i32_0 = arith.constant 0 : i32
    %c0_i32_1 = arith.constant 0 : i32
    return %c0_i32, %c0_i32_0 : i32, i32
  }
  func.func @transform_9(%arg0: i32, %arg1: i32) -> (i32, i32) {
    %c2_i32 = arith.constant 2 : i32
    %0 = arith.cmpi eq, %arg0, %c2_i32 : i32
    %c0_i32 = arith.constant 0 : i32
    %1 = arith.select %0, %arg1, %c0_i32 : i32
    %c0_i32_0 = arith.constant 0 : i32
    %c0_i32_1 = arith.constant 0 : i32
    return %1, %c0_i32_0 : i32, i32
  }
}

</mosaic_0001>

<bundles_post_ra>
// kernel: tpu_custom_call.1
= control target key start
LH: loop header
LB: loop body
LE: loop exit
PB: predicated region body
PF: predicated region fallthrough
CT: control target
= control target key end

     0   :  { %14 = vsyncpa [#allocation13], 0  ;;  %s1785_s30 = smov 0   ;;  %s1787_s10 = smov 0   ;;  %s2025_s0 = inlined_call_operand.vmem [shape: bf16[128,256], index: 0, kind: input, shape index: {}]   ;;  %s2026_s1 = inlined_call_operand.hbm [shape: bf16[256,128], index: 1, kind: input, shape index: {}]   ;;  %s2027_s2 = inlined_call_operand.vmem [shape: f32[1,128], index: 2, kind: input, shape index: {}]   ;;  %s2028_s3 = inlined_call_operand.vmem [shape: f32[1,128], index: 3, kind: input, shape index: {}]   ;;  %s2029_s4 = inlined_call_operand.vmem [shape: bf16[128,64], index: 4, kind: input, shape index: {}]   ;;  %s2030_s5 = inlined_call_operand.vmem [shape: f32[1,64], index: 5, kind: input, shape index: {}]   ;;  %s2031_s6 = inlined_call_operand.vmem [shape: f32[1,64], index: 6, kind: input, shape index: {}]   ;;  %s2032_s7 = inlined_call_operand.vmem [shape: bf16[64,2], index: 7, kind: input, shape index: {}]   ;;  %s2033_s8 = inlined_call_operand.vmem [shape: f32[1,2], index: 8, kind: input, shape index: {}]   ;;  %s2034_s9 = inlined_call_operand.vmem [shape: f32[128,2], index: 9, kind: output, shape index: {}]  }
   0x1   :  { %s1789_s11 = smov 0   ;;  %s1791_s12 = smov 0  }
   0x2   :  { %s1793_s13 = smov 0  }
   0x3 LB: > { %s1330_s14 = sadd.s32 4294967295, %s1727_s13   ;;  %s29_s15 = sadd.s32 1, %s1719_s11  ;;  %s1727_s13 = sphi %s1793_s13, %s20_s13   ;;  %s1723_s12 = sphi %s1791_s12, %s2046_s12   ;;  %s1719_s11 = sphi %s1789_s11, %s2045_s11   ;;  %s1715_s10 = sphi %s1787_s10, %s2044_s10   ;;  %s1711_s30 = sphi %s1785_s30, %s2043_s30  }
   0x4   : > { %p30_p0 = scmp.ge.s32.totalorder %s29_s15, 2  ;;  %s32_s16 = sadd.s32 1, %s1723_s12 }
   0x5   : > { %p1332_p1 = scmp.ge.s32.totalorder %s1727_s13, 1  ;;  %p265_p2 = scmp.lt.s32.totalorder %s1727_s13, 7 }
   0x6   : > { %s2048_s15 = smov (%p30_p0, %s29_s15), 0  ;;  %s2050_s16 = smov (!%p30_p0, %s32_s16), %s1723_s12 }
   0x7   : > { %p1818_p3 = pnand %p1332_p1, %p265_p2  ;;  %p34_p4 = scmp.ge.s32.totalorder %s2050_s16, 3 }
   0x8   : > { %p1822_p5 = scmp.eq.s32.totalorder %s1330_s14, 0  ;;  %s1729_s19 = smov [#allocation12]  }
   0x9   : > { %s2038_s17 = scalar_select %p1818_p3, 1, 0 }
   0xa   : > { %s2039_s18 = scalar_select %p1822_p5, 1, 0 }
   0xb   : > { %p1561_p6 = pneg %p1818_p3  ;;  %s2052_s16 = smov (%p34_p4, %s2050_s16), 0 }
   0xc   : > { %s277_s20 = sshll.u32 %s1729_s19, 4  ;;  %s1657_s24 = scalar_lea.hbm %s2026_s1, 2048  ;;  %s278_s20 = int_to_ptr.vmem [resolvable:$true] %s277_s20 }
   0xd   : > { %p1832_p7 = pnand %p1822_p5, %p1561_p6  ;;  %p1658_p8 = scmp.ne.s32.totalorder %s2026_s1, %s1657_s24 }
   0xe   : > { %p1664_p12 = scmp.lt.u32.totalorder %s1657_s24, %s2026_s1 }
   0xf   : > { %p1659_p9 = pneg %p1832_p7 }
  0x11   : > { %p1660_p10 = pnand %p1659_p9, %p1658_p8 }
  0x13   : > { %p1661_p11 = pneg %p1660_p10 }
  0x15   : > { %p1666_p13 = pnand %p1664_p12, %p1661_p11 }
  0x17   : > { %1669 = shalt.err (!%p1666_p13)
}
  0x18   : > { %s1670_s29 = scalar_lea.vmem %s278_s20, 2048  ;;  %p1678_p4 = scmp.lt.s32.totalorder %s278_s20, %s278_s20 }
  0x19   : > { %p1671_p0 = scmp.ne.s32.totalorder %s278_s20, %s1670_s29  ;;  %p1679_p6 = scmp.lt.s32.totalorder %s1670_s29, %s1670_s29 }
  0x1b   : > { %p1673_p1 = pnand %p1671_p0, %p1659_p9  ;;  %p1680_p5 = por %p1679_p6, %p1678_p4 }
  0x1d   : > { %p1674_p2 = pneg %p1673_p1 }
  0x1f   : > { %p1681_p3 = pnand %p1680_p5, %p1674_p2 }
  0x21   : > { %1684 = shalt.err (!%p1681_p3)
}
  0x22   : > { %s1730_s14 = smov 64   ;;  %s1731_s19 = smov 4  }
  0x23   : > { %1564 = dma.hbm_to_vmem [thread:$0]  (!%p1832_p7), %s2026_s1, 2048, %s278_s20, [#allocation13], %s1730_s14, %s1730_s14, %s1731_s19  }
  0x24   : > { %p2041_p8 = scmp.ne.s32.totalorder %s2038_s17, 0 }
  0x25   : > { %p2042_p10 = scmp.ne.s32.totalorder (!%p2041_p8), %s2039_s18, 0 }
  0x26   : > { %328 = sbr.rel (%p2041_p8) target bundleno = 951 (0x3b7), region = 56 }
  0x2d   : > { %1706 = dma.done.wait (%p2042_p10), [#allocation13], 2048  }
  0x2e   : > { %1708 = vsyncadd (%p2042_p10), [#allocation13], 4294965248  ;;  %p369_p3 = scmp.eq.s32.totalorder %s1715_s10, 0  ;;  %p380_p5 = scmp.eq.s32.totalorder %s1715_s10, 2  ;;  %v392_v0 = vlaneseq  ;;  %v1732_v18 = vmov 0.0  }
  0x2f   : > { %s1342_s21 = sshll.u32 %s1711_s30, 6  ;;  %p1351_p11 = scmp.ne.s32.totalorder %s1715_s10, 0 }
  0x30   : > { %s370_s24 = scalar_select %p369_p3, %s1711_s30, 0  ;;  %v393_v1 = vshrl.u32 %v392_v0, 7  ;;  %v401_v2 = vstv %s1342_s21 }
  0x31   : > { %s381_s17 = scalar_select %p380_p5, %s1711_s30, 0 }
  0x32   : > { %s1337_s20 = sshll.u32 %s370_s24, 3  ;;  %v394_v3 = vadd.s32 8, %v393_v1  ;;  %v395_v4 = vadd.s32 16, %v393_v1  ;;  %v396_v5 = vadd.s32 24, %v393_v1  ;;  %v397_v6 = vadd.s32 32, %v393_v1  ;;  %p1352_p12 = scmp.ne.s32.totalorder (!%p1351_p11), %s1711_s30, 0 }
  0x33   : > { %p372_p7 = scmp.lt.s32.totalorder %s1337_s20, 15  ;;  %s1340_s18 = sshll.u32 %s381_s17, 3  ;;  %v398_v7 = vadd.s32 40, %v393_v1  ;;  %v399_v8 = vadd.s32 48, %v393_v1  ;;  %v400_v9 = vadd.s32 56, %v393_v1  ;;  %v402_v10 = vadd.s32 %v401_v2, %v393_v1 }
  0x34   : > { %p383_p9 = scmp.lt.s32.totalorder %s1340_s18, 15  ;;  %v403_v11 = vadd.s32 %v401_v2, %v394_v3  ;;  %v404_v12 = vadd.s32 %v401_v2, %v395_v4  ;;  %v405_v13 = vadd.s32 %v401_v2, %v396_v5  ;;  %v406_v14 = vadd.s32 %v401_v2, %v397_v6  ;;  %437 = sbr.rel (%p1351_p11) target bundleno = 384 (0x180), region = 64 }
  0x35   : > { %s2054_s20 = smov (!%p372_p7, %s1337_s20), 15  ;;  %v407_v15 = vadd.s32 %v401_v2, %v398_v7  ;;  %v408_v16 = vadd.s32 %v401_v2, %v399_v8  ;;  %v409_v17 = vadd.s32 %v401_v2, %v400_v9  ;;  %vm410_vm0 = vcmp.lt.s32.totalorder %v402_v10, 96 }
  0x36   : > { %s2056_s18 = smov (!%p383_p9, %s1340_s18), 15  ;;  %vm411_vm1 = vcmp.lt.s32.totalorder %v403_v11, 96  ;;  %vm412_vm2 = vcmp.lt.s32.totalorder %v404_v12, 96  ;;  %vm413_vm3 = vcmp.lt.s32.totalorder %v405_v13, 96  ;;  %vm414_vm4 = vcmp.lt.s32.totalorder %v406_v14, 96  ;;  %s1412_s25 = sshll.u32 %s2054_s20, 3 }
  0x37   : > { %vm415_vm5 = vcmp.lt.s32.totalorder %v407_v15, 96  ;;  %vm416_vm6 = vcmp.lt.s32.totalorder %v408_v16, 96  ;;  %vm417_vm7 = vcmp.lt.s32.totalorder %v409_v17, 96  ;;  %v1863_v19 = vsel %vm410_vm0, 1.0, %v1732_v18  ;;  %s1868_s28 = scalar_lea.vmem %s2025_s0, %s1412_s25  ;;  %s1341_s29 = sshll.u32 %s2056_s18, 3 }
  0x38   : > { %v1870_v20 = vsel %vm411_vm1, 1.0, %v1732_v18  ;;  %v1872_v21 = vsel %vm412_vm2, 1.0, %v1732_v18  ;;  %v1874_v22 = vsel %vm413_vm3, 1.0, %v1732_v18  ;;  %v1876_v23 = vsel %vm414_vm4, 1.0, %v1732_v18  ;;  %s1881_s22 = scalar_lea.vmem %s2034_s9, %s1341_s29 }
  0x39   : > { %v1883_v24 = vsel %vm415_vm5, 1.0, %v1732_v18  ;;  %v1885_v25 = vsel %vm416_vm6, 1.0, %v1732_v18  ;;  %v1887_v26 = vsel %vm417_vm7, 1.0, %v1732_v18 }
  0x3b   : > { %441 = sbr.rel (%p1352_p12) target bundleno = 66 (0x42), region = 68  ;;  %v1733_v27 = vmov (!%p1352_p12), 0.0  }
  0x3c   : > { %442 = vst [vmem:[#allocation2] sm:$0x1] (!%p1352_p12), %v1733_v27  ;;  %443 = vst [vmem:[#allocation3] sm:$0x1] (!%p1352_p12), %v1733_v27 }
  0x42 PF: > { %v1613_v28 = vld [vmem:[#allocation12 + $0x40] sm:$0xff]   ;;  %v1615_v30 = vld [vmem:[#allocation12 + $0x48] sm:$0xff]   ;;  %v1617_v32 = vld [vmem:[#allocation12 + $0x50] sm:$0xff]   ;;  %s1413_s23 = sshll.u32 %s1711_s30, 5  ;;  %p1379_p13 = scmp.ne.s32.totalorder %s1711_s30, 1 }
  0x43   : > { %v1614_v29 = vld [vmem:[#allocation12] sm:$0xff]   ;;  %1417 = vmatprep.subr.bf16.mxu0 %v1613_v28  ;;  %1517 = vmatprep.subr.bf16.mxu1 %v1613_v28  ;;  %v1616_v31 = vld [vmem:[#allocation12 + $0x8] sm:$0xff]   ;;  %v1618_v33 = vld [vmem:[#allocation12 + $0x10] sm:$0xff]   ;;  %s691_s21 = scalar_lea.vmem [#allocation10], %s1413_s23 }
  0x44   : > { %1418 = vmatpush3.bf16.msra.mxu0 %v1614_v29  ;;  %1525 = vmatpush3.bf16.msra.mxu1 %v1614_v29  ;;  %v1619_v34 = vld [vmem:[#allocation12 + $0x58] sm:$0xff]   ;;  %v1621_v36 = vld [vmem:[#allocation12 + $0x60] sm:$0xff]   ;;  %v1623_v38 = vld [vmem:[#allocation12 + $0x68] sm:$0xff]  }
  0x45   : > { %1419 = vmatprep.subr.bf16.mxu0 %v1615_v30  ;;  %1518 = vmatprep.subr.bf16.mxu1 %v1615_v30  ;;  %v1620_v35 = vld [vmem:[#allocation12 + $0x18] sm:$0xff]   ;;  %v1622_v37 = vld [vmem:[#allocation12 + $0x20] sm:$0xff]   ;;  %v1624_v41 = vld [vmem:[#allocation12 + $0x28] sm:$0xff]  }
  0x46   : > { %v1631_v39 = vld [vmem:[%s1868_s28 + $0x4] ss:$8 sps:$4 sm:$0xff]   ;;  %v1625_v42 = vld [vmem:[#allocation12 + $0x70] sm:$0xff]   ;;  %v1629_v46 = vld [vmem:[%s1868_s28] ss:$8 sps:$4 sm:$0xff]  }
  0x47   : > { %v1634_v40 = vld [vmem:[%s1868_s28 + $0x24] ss:$8 sps:$4 sm:$0xff]   ;;  %652 = vmatprep.mubr.bf16.mxu0 %v1631_v39  ;;  %v1626_v43 = vld [vmem:[#allocation12 + $0x30] sm:$0xff]   ;;  %v1632_v47 = vld [vmem:[%s1868_s28 + $0x20] ss:$8 sps:$4 sm:$0xff]  }
  0x48   : > { %1420 = vmatpush3.bf16.msra.mxu0 %v1616_v31  ;;  %1526 = vmatpush3.bf16.msra.mxu1 %v1616_v31  ;;  %v1627_v44 = vld [vmem:[#allocation12 + $0x78] sm:$0xff]   ;;  %v1635_v48 = vld [vmem:[%s1868_s28 + $0x14] ss:$8 sps:$4 sm:$0xff]   ;;  %v1637_v50 = vld [vmem:[%s1868_s28 + $0x10] ss:$8 sps:$4 sm:$0xff]  }
  0x49   : > { %1421 = vmatprep.subr.bf16.mxu0 %v1617_v32  ;;  %1519 = vmatprep.subr.bf16.mxu1 %v1617_v32  ;;  %v1628_v45 = vld [vmem:[#allocation12 + $0x38] sm:$0xff]   ;;  %v1638_v49 = vld [vmem:[%s1868_s28 + $0x34] ss:$8 sps:$4 sm:$0xff]   ;;  %v1640_v51 = vld [vmem:[%s1868_s28 + $0x30] ss:$8 sps:$4 sm:$0xff]  }
  0x4a   : > { %668 = vmatprep.mubr.bf16.mxu1 %v1634_v40 }
  0x4c   : > { %1422 = vmatpush3.bf16.msra.mxu0 %v1618_v33  ;;  %1527 = vmatpush3.bf16.msra.mxu1 %v1618_v33 }
  0x4d   : > { %1423 = vmatprep.subr.bf16.mxu0 %v1619_v34  ;;  %1520 = vmatprep.subr.bf16.mxu1 %v1619_v34 }
  0x50   : > { %1424 = vmatpush3.bf16.msra.mxu0 %v1620_v35  ;;  %1528 = vmatpush3.bf16.msra.mxu1 %v1620_v35 }
  0x51   : > { %1425 = vmatprep.subr.bf16.mxu0 %v1621_v36  ;;  %1521 = vmatprep.subr.bf16.mxu1 %v1621_v36 }
  0x54   : > { %1426 = vmatpush3.bf16.msra.mxu0 %v1622_v37  ;;  %1529 = vmatpush3.bf16.msra.mxu1 %v1622_v37 }
  0x55   : > { %1427 = vmatprep.subr.bf16.mxu0 %v1623_v38  ;;  %1522 = vmatprep.subr.bf16.mxu1 %v1623_v38 }
  0x58   : > { %1428 = vmatpush3.bf16.msra.mxu0 %v1624_v41  ;;  %1530 = vmatpush3.bf16.msra.mxu1 %v1624_v41 }
  0x59   : > { %1429 = vmatprep.subr.bf16.mxu0 %v1625_v42  ;;  %1523 = vmatprep.subr.bf16.mxu1 %v1625_v42 }
  0x5c   : > { %1430 = vmatpush3.bf16.msra.mxu0 %v1626_v43  ;;  %1531 = vmatpush3.bf16.msra.mxu1 %v1626_v43 }
  0x5d   : > { %1431 = vmatprep.subr.bf16.mxu0 %v1627_v44  ;;  %1524 = vmatprep.subr.bf16.mxu1 %v1627_v44 }
  0x60   : > { %1432 = vmatpush3.bf16.msra.mxu0 %v1628_v45  ;;  %1532 = vmatpush3.bf16.msra.mxu1 %v1628_v45 }
  0x63   : > { %653 = vmatmul.mubr.bf16.vlgmr.msra.gmra.mrb[0].mxu0 %v1629_v46  ;;  %669 = vmatmul.mubr.bf16.vlgmr.msra.gmra.mrb[0].mxu1 %v1632_v47 }
  0x64   : > { %660 = vmatprep.mubr.bf16.mxu0 %v1635_v48  ;;  %676 = vmatprep.mubr.bf16.mxu1 %v1638_v49 }
  0x6b   : > { %661 = vmatmul.mubr.bf16.gmra.mrb[4].mxu0 %v1637_v50  ;;  %677 = vmatmul.mubr.bf16.gmra.mrb[4].mxu1 %v1640_v51 }
 0x136   : > { %v1433_v52 = vpop.f32.mrb[0].mxu0  ;;  %v1445_v53 = vpop.f32.mrb[0].mxu1 }
 0x137   : > { %v1434_v54 = vpop.f32.mrb[1].mxu0  ;;  %v1446_v55 = vpop.f32.mrb[1].mxu1 }
 0x138   : > { %v1435_v56 = vadd.f32 %v1434_v54, %v1433_v52  ;;  %v1436_v57 = vpop.f32.mrb[2].mxu0  ;;  %v1447_v58 = vadd.f32 %v1446_v55, %v1445_v53  ;;  %v1448_v59 = vpop.f32.mrb[2].mxu1  ;;  %v696_v55 = vld [vmem:[#allocation2] sm:$0x1] }
 0x139   : > { %v1437_v60 = vpop.f32.mrb[3].mxu0  ;;  %v1449_v61 = vpop.f32.mrb[3].mxu1 }
 0x13a   : > { %v1438_v62 = vadd.f32 %v1437_v60, %v1436_v57  ;;  %v1450_v63 = vadd.f32 %v1449_v61, %v1448_v59  ;;  %v713_v0 = vmul.f32 %v1435_v56, %v1435_v56  ;;  %v717_v33 = vmul.f32 %v1447_v58, %v1447_v58 }
 0x13c   : > { %v685_v1 = vpack.c.bf16 %v1438_v62, %v1435_v56  ;;  %v697_v2 = vadd.f32 %v1438_v62, %v1435_v56  ;;  %v714_v3 = vmul.f32 %v1438_v62, %v1438_v62  ;;  %v687_v4 = vpack.c.bf16 %v1450_v63, %v1447_v58 }
 0x13d   : > { %v718_v36 = vmul.f32 %v1450_v63, %v1450_v63 }
 0x13e   : > { %692 = vst [vmem:[%s691_s21] sm:$0xff] %v685_v1  ;;  %v721_v5 = vadd.f32 %v714_v3, %v713_v0  ;;  %v1439_v6 = vpop.f32.mrb[4].mxu0  ;;  %694 = vst [vmem:[%s691_s21 + $0x10] sm:$0xff] %v687_v4  ;;  %v1451_v7 = vpop.f32.mrb[4].mxu1 }
 0x13f   : > { %v1440_v8 = vpop.f32.mrb[5].mxu0  ;;  %v1452_v9 = vpop.f32.mrb[5].mxu1 }
 0x140   : > { %v1441_v10 = vadd.f32 %v1440_v8, %v1439_v6  ;;  %v1442_v11 = vpop.f32.mrb[6].mxu0  ;;  %v1453_v12 = vadd.f32 %v1452_v9, %v1451_v7  ;;  %v1454_v13 = vpop.f32.mrb[6].mxu1  ;;  %v747_v6 = vld [vmem:[%s2027_s2] sm:$0x1] (!%p1379_p13) }
 0x141   : > { %v1443_v14 = vpop.f32.mrb[7].mxu0  ;;  %v1455_v15 = vpop.f32.mrb[7].mxu1  ;;  %v752_v9 = vld [vmem:[%s2028_s3] sm:$0x1] (!%p1379_p13) }
 0x142   : > { %v698_v16 = vadd.f32 %v1441_v10, %v697_v2  ;;  %v715_v17 = vmul.f32 %v1441_v10, %v1441_v10  ;;  %v1444_v18 = vadd.f32 %v1443_v14, %v1442_v11  ;;  %v1456_v27 = vadd.f32 %v1455_v15, %v1454_v13 }
 0x143   : > { %v719_v39 = vmul.f32 %v1453_v12, %v1453_v12 }
 0x144   : > { %v722_v28 = vadd.f32 %v721_v5, %v715_v17  ;;  %v686_v29 = vpack.c.bf16 %v1444_v18, %v1441_v10  ;;  %v699_v30 = vadd.f32 %v1444_v18, %v698_v16  ;;  %v716_v31 = vmul.f32 %v1444_v18, %v1444_v18 }
 0x145   : > { %v688_v32 = vpack.c.bf16 %v1456_v27, %v1453_v12  ;;  %v720_v44 = vmul.f32 %v1456_v27, %v1456_v27 }
 0x146   : > { %693 = vst [vmem:[%s691_s21 + $0x8] sm:$0xff] %v686_v29  ;;  %v700_v34 = vadd.f32 %v1447_v58, %v699_v30  ;;  %v723_v35 = vadd.f32 %v722_v28, %v716_v31  ;;  %v712_v58 = vld [vmem:[#allocation3] sm:$0x1] }
 0x147   : > { %695 = vst [vmem:[%s691_s21 + $0x18] sm:$0xff] %v688_v32 }
 0x148   : > { %v724_v37 = vadd.f32 %v723_v35, %v717_v33  ;;  %v701_v38 = vadd.f32 %v1450_v63, %v700_v34 }
 0x14a   : > { %v702_v40 = vadd.f32 %v1453_v12, %v701_v38  ;;  %v725_v41 = vadd.f32 %v724_v37, %v718_v36 }
 0x14c   : > { %v726_v42 = vadd.f32 %v725_v41, %v719_v39  ;;  %v703_v43 = vadd.f32 %v1456_v27, %v702_v40 }
 0x14e   : > { %v704_v45 = vrot.slane %v703_v43, 4  ;;  %v727_v46 = vadd.f32 %v726_v42, %v720_v44 }
 0x150   : > { %v705_v47 = vadd.f32 %v704_v45, %v703_v43  ;;  %v728_v48 = vrot.slane %v727_v46, 4 }
 0x152   : > { %v706_v49 = vrot.slane %v705_v47, 2  ;;  %v729_v50 = vadd.f32 %v728_v48, %v727_v46 }
 0x154   : > { %v707_v51 = vadd.f32 %v706_v49, %v705_v47  ;;  %v730_v52 = vrot.slane %v729_v50, 2 }
 0x156   : > { %v708_v53 = vrot.slane %v707_v51, 1  ;;  %v731_v54 = vadd.f32 %v730_v52, %v729_v50 }
 0x158   : > { %v709_v56 = vadd.f32 %v708_v53, %v707_v51  ;;  %v732_v57 = vrot.slane %v731_v54, 1  ;;  %739 = sbr.rel (%p1379_p13) target bundleno = 384 (0x180), region = 72 }
 0x15a   : > { %v710_v59 = vadd.f32 %v709_v56, %v696_v55  ;;  %v733_v60 = vadd.f32 %v732_v57, %v731_v54 }
 0x15c   : > { %711 = vst [vmem:[#allocation2] sm:$0x1] %v710_v59  ;;  %v734_v61 = vadd.f32 %v733_v60, %v712_v58 }
 0x15e   : > { %735 = vst [vmem:[#allocation3] sm:$0x1] %v734_v61 }
 0x163   : > { %v740_v62 = vld [vmem:[#allocation2] sm:$0x1] }
 0x164   : > { %v741_v0 = vmul.f32 0.010416667, %v740_v62 }
 0x165   : > { %v742_v63 = vld [vmem:[#allocation3] sm:$0x1] }
 0x166   : > { %v743_v1 = vmul.f32 0.010416667, %v742_v63  ;;  %v744_v2 = vmul.f32 %v741_v0, %v741_v0 }
 0x168   : > { %v745_v3 = vsub.f32 %v743_v1, %v744_v2 }
 0x16a   : > { %v746_v4 = vmax.f32 %v745_v3, 0.0 }
 0x16c   : > { %v748_v5 = vadd.f32 1e-05, %v746_v4 }
 0x16e   : > { %1641 = vrsqrt.f32 %v748_v5 }
 0x178   : > { %v1642_v7 = vpop.eup %1641 }
 0x179   : > { %v750_v8 = vmul.f32 %v1642_v7, %v747_v6 }
 0x17b   : > { %751 = vst [vmem:[#allocation4] sm:$0x1] %v750_v8  ;;  %v753_v10 = vmul.f32 %v750_v8, %v741_v0 }
 0x17d   : > { %v754_v11 = vsub.f32 %v752_v9, %v753_v10 }
 0x17f   : > { %755 = vst [vmem:[#allocation5] sm:$0x1] %v754_v11 }
 0x180 PF: > { %p1380_p0 = scmp.ne.s32.totalorder %s1715_s10, 1 }
 0x181   : > { %p1381_p1 = scmp.ne.s32.totalorder (!%p1380_p0), %s1711_s30, 0 }
 0x182   : > { %759 = sbr.rel (%p1380_p0) target bundleno = 715 (0x2cb), region = 76 }
 0x189   : > { %763 = sbr.rel (%p1381_p1) target bundleno = 400 (0x190), region = 80  ;;  %vm764_vm8 = vcmask (!%p1381_p1), 516096   ;;  %v1734_v12 = vmov (!%p1381_p1), 0.0  }
 0x18a   : > { %765 = vst.msk [vmem:[#allocation6] sm:$0x1] (!%p1381_p1), %vm764_vm8, %v1734_v12  ;;  %766 = vst.msk [vmem:[#allocation7] sm:$0x1] (!%p1381_p1), %vm764_vm8, %v1734_v12 }
 0x190 PF: > { %v1643_v13 = vld [vmem:[%s2029_s4] sm:$0xff]   ;;  %v1644_v14 = vld [vmem:[%s2029_s4 + $0x8] sm:$0xff]   ;;  %s1414_s29 = sshll.u32 %s1711_s30, 5  ;;  %v1645_v15 = vld [vmem:[%s2029_s4 + $0x10] sm:$0xff]   ;;  %vm959_vm9 = vcmask 523264   ;;  %vm995_vm10 = vcmask 516096  }
 0x191   : > { %1477 = vmatprep.subr.bf16.mxu0 %v1643_v13  ;;  %1533 = vmatprep.subr.bf16.mxu1 %v1643_v13  ;;  %v1646_v16 = vld [vmem:[%s2029_s4 + $0x18] sm:$0xff]   ;;  %s769_s24 = scalar_lea.vmem [#allocation10], %s1414_s29  ;;  %v1384_v18 = vld [vmem:[#allocation4] ss:$0 sm:$0xff]  ;;  %v1385_v30 = vld [vmem:[#allocation5] ss:$0 sm:$0xff] }
 0x192   : > { %1478 = vmatpush3.bf16.msra.mxu0 %v1643_v13  ;;  %1541 = vmatpush3.bf16.msra.mxu1 %v1643_v13  ;;  %v770_v17 = vld [vmem:[%s769_s24] sm:$0xff]  ;;  %v772_v29 = vld [vmem:[%s769_s24 + $0x10] sm:$0xff]  ;;  %v771_v31 = vld [vmem:[%s769_s24 + $0x8] sm:$0xff]  ;;  %s958_s19 = scalar_lea.vmem [#allocation11], %s1414_s29  ;;  %p1395_p2 = scmp.ne.s32.totalorder %s1711_s30, 1 }
 0x193   : > { %1479 = vmatprep.subr.bf16.mxu0 %v1644_v14  ;;  %1534 = vmatprep.subr.bf16.mxu1 %v1644_v14  ;;  %v774_v27 = vunpack.c.l.bf16 %v770_v17  ;;  %v775_v28 = vunpack.c.h.bf16 %v770_v17  ;;  %v778_v32 = vunpack.c.l.bf16 %v772_v29  ;;  %v779_v33 = vunpack.c.h.bf16 %v772_v29  ;;  %v773_v36 = vld [vmem:[%s769_s24 + $0x18] sm:$0xff]  ;;  %v1647_v37 = vld [vmem:[%s2029_s4 + $0x20] sm:$0xff]   ;;  %v1648_v50 = vld [vmem:[%s2029_s4 + $0x28] sm:$0xff]  }
 0x194   : > { %v776_v41 = vunpack.c.l.bf16 %v771_v31  ;;  %v777_v43 = vunpack.c.h.bf16 %v771_v31  ;;  %v780_v45 = vunpack.c.l.bf16 %v773_v36  ;;  %v781_v46 = vunpack.c.h.bf16 %v773_v36  ;;  %v1649_v59 = vld [vmem:[%s2029_s4 + $0x30] sm:$0xff]   ;;  %v1650_v0 = vld [vmem:[%s2029_s4 + $0x38] sm:$0xff]  }
 0x195   : > { %v789_v34 = vmul.f32 %v1384_v18, %v774_v27  ;;  %v790_v35 = vmul.f32 %v1384_v18, %v775_v28  ;;  %v793_v38 = vmul.f32 %v1384_v18, %v778_v32  ;;  %v794_v42 = vmul.f32 %v1384_v18, %v779_v33 }
 0x196   : > { %1480 = vmatpush3.bf16.msra.mxu0 %v1644_v14  ;;  %1542 = vmatpush3.bf16.msra.mxu1 %v1644_v14  ;;  %v791_v54 = vmul.f32 %v1384_v18, %v776_v41  ;;  %v792_v55 = vmul.f32 %v1384_v18, %v777_v43  ;;  %v795_v56 = vmul.f32 %v1384_v18, %v780_v45 }
 0x197   : > { %1481 = vmatprep.subr.bf16.mxu0 %v1645_v15  ;;  %1535 = vmatprep.subr.bf16.mxu1 %v1645_v15  ;;  %v804_v39 = vadd.f32 %v1385_v30, %v789_v34  ;;  %v805_v40 = vadd.f32 %v1385_v30, %v790_v35  ;;  %v808_v44 = vadd.f32 %v1385_v30, %v793_v38 }
 0x198   : > { %v809_v49 = vadd.f32 %v1385_v30, %v794_v42  ;;  %v796_v57 = vmul.f32 %v1384_v18, %v781_v46  ;;  %v806_v60 = vadd.f32 %v1385_v30, %v791_v54  ;;  %v807_v61 = vadd.f32 %v1385_v30, %v792_v55 }
 0x199   : > { %v812_v47 = vmax.f32 %v804_v39, 0.0  ;;  %v813_v48 = vmax.f32 %v805_v40, 0.0  ;;  %v816_v51 = vmax.f32 %v808_v44, 0.0  ;;  %v810_v62 = vadd.f32 %v1385_v30, %v795_v56 }
 0x19a   : > { %1482 = vmatpush3.bf16.msra.mxu0 %v1645_v15  ;;  %1543 = vmatpush3.bf16.msra.mxu1 %v1645_v15  ;;  %v817_v53 = vmax.f32 %v809_v49, 0.0  ;;  %v811_v63 = vadd.f32 %v1385_v30, %v796_v57  ;;  %v814_v1 = vmax.f32 %v806_v60, 0.0  ;;  %v815_v2 = vmax.f32 %v807_v61, 0.0 }
 0x19b   : > { %1483 = vmatprep.subr.bf16.mxu0 %v1646_v16  ;;  %1536 = vmatprep.subr.bf16.mxu1 %v1646_v16  ;;  %v820_v52 = vpack.c.bf16 %v813_v48, %v812_v47  ;;  %v818_v3 = vmax.f32 %v810_v62, 0.0 }
 0x19c   : > { %v822_v58 = vpack.c.bf16 %v817_v53, %v816_v51  ;;  %v819_v4 = vmax.f32 %v811_v63, 0.0  ;;  %v821_v5 = vpack.c.bf16 %v815_v2, %v814_v1 }
 0x19d   : > { %1493 = vmatprep.mubr.bf16.mxu0 %v820_v52 }
 0x19e   : > { %1484 = vmatpush3.bf16.msra.mxu0 %v1646_v16  ;;  %1544 = vmatpush3.bf16.msra.mxu1 %v1646_v16  ;;  %v823_v6 = vpack.c.bf16 %v819_v4, %v818_v3 }
 0x19f   : > { %1485 = vmatprep.subr.bf16.mxu0 %v1647_v37  ;;  %1537 = vmatprep.subr.bf16.mxu1 %v1647_v37 }
 0x1a0   : > { %1497 = vmatprep.mubr.bf16.mxu1 %v822_v58 }
 0x1a2   : > { %1486 = vmatpush3.bf16.msra.mxu0 %v1647_v37  ;;  %1545 = vmatpush3.bf16.msra.mxu1 %v1647_v37 }
 0x1a3   : > { %1487 = vmatprep.subr.bf16.mxu0 %v1648_v50  ;;  %1538 = vmatprep.subr.bf16.mxu1 %v1648_v50 }
 0x1a6   : > { %1488 = vmatpush3.bf16.msra.mxu0 %v1648_v50  ;;  %1546 = vmatpush3.bf16.msra.mxu1 %v1648_v50 }
 0x1a7   : > { %1489 = vmatprep.subr.bf16.mxu0 %v1649_v59  ;;  %1539 = vmatprep.subr.bf16.mxu1 %v1649_v59 }
 0x1aa   : > { %1490 = vmatpush3.bf16.msra.mxu0 %v1649_v59  ;;  %1547 = vmatpush3.bf16.msra.mxu1 %v1649_v59 }
 0x1ab   : > { %1491 = vmatprep.subr.bf16.mxu0 %v1650_v0  ;;  %1540 = vmatprep.subr.bf16.mxu1 %v1650_v0 }
 0x1ae   : > { %1492 = vmatpush3.bf16.msra.mxu0 %v1650_v0  ;;  %1548 = vmatpush3.bf16.msra.mxu1 %v1650_v0 }
 0x1b1   : > { %1494 = vmatmul.mubr.bf16.vlgmr.msra.gmra.mrb[0].mxu0 %v821_v5  ;;  %1498 = vmatmul.mubr.bf16.vlgmr.msra.gmra.mrb[0].mxu1 %v823_v6 }
 0x284   : > { %v1495_v7 = vpop.f32.mrb[0].mxu0  ;;  %v1499_v8 = vpop.f32.mrb[0].mxu1 }
 0x285   : > { %v922_v9 = vpop.f32.mrb[1].mxu0  ;;  %v938_v10 = vpop.f32.mrb[1].mxu1  ;;  %v966_v11 = vmul.f32 %v1495_v7, %v1872_v21  ;;  %v970_v39 = vmul.f32 %v1499_v8, %v1885_v25 }
 0x286   : > { %v964_v12 = vmul.f32 %v1863_v19, %v922_v9  ;;  %v1496_v13 = vpop.f32.mrb[2].mxu0  ;;  %v1500_v14 = vpop.f32.mrb[2].mxu1  ;;  %v968_v30 = vmul.f32 %v1876_v23, %v938_v10 }
 0x287   : > { %v954_v15 = vpack.c.bf16 %v1496_v13, %v1495_v7  ;;  %v967_v16 = vmul.f32 %v1496_v13, %v1874_v22  ;;  %v925_v17 = vpop.f32.mrb[3].mxu0  ;;  %v941_v18 = vpop.f32.mrb[3].mxu1  ;;  %v1000_v21 = vmul.f32 %v966_v11, %v966_v11  ;;  %v976_v32 = vsel %vm959_vm9, %v966_v11, 0.0  ;;  %v997_v13 = vld [vmem:[#allocation7] sm:$0x1] }
 0x288   : > { %v998_v27 = vmul.f32 %v964_v12, %v964_v12  ;;  %v953_v28 = vpack.c.bf16 %v925_v17, %v922_v9  ;;  %v965_v29 = vmul.f32 %v1870_v20, %v925_v17  ;;  %v973_v19 = vsel %vm959_vm9, %v964_v12, 0.0 }
 0x289   : > { %961 = vst.msk [vmem:[%s958_s19 + $0x8] sm:$0xff] %vm959_vm9, %v954_v15  ;;  %v1001_v33 = vmul.f32 %v967_v16, %v967_v16  ;;  %v1002_v35 = vmul.f32 %v968_v30, %v968_v30  ;;  %v956_v36 = vpack.c.bf16 %v1500_v14, %v1499_v8  ;;  %v955_v40 = vpack.c.bf16 %v941_v18, %v938_v10  ;;  %v972_v10 = vld [vmem:[#allocation6] sm:$0x1] }
 0x28a   : > { %960 = vst.msk [vmem:[%s958_s19] sm:$0xff] %vm959_vm9, %v953_v28  ;;  %v974_v31 = vsel %vm959_vm9, %v965_v29, 0.0  ;;  %v999_v22 = vmul.f32 %v965_v29, %v965_v29  ;;  %v1006_v20 = vsel %vm959_vm9, %v998_v27, 0.0  ;;  %v1009_v41 = vsel %vm959_vm9, %v1000_v21, 0.0 }
 0x28b   : > { %v975_v34 = vadd.f32 %v974_v31, %v973_v19  ;;  %v978_v42 = vsel %vm959_vm9, %v967_v16, 0.0  ;;  %v980_v43 = vsel %vm959_vm9, %v968_v30, 0.0  ;;  %963 = vst.msk [vmem:[%s958_s19 + $0x18] sm:$0xff] %vm959_vm9, %v956_v36  ;;  %v969_v44 = vmul.f32 %v1883_v24, %v941_v18  ;;  %962 = vst.msk [vmem:[%s958_s19 + $0x10] sm:$0xff] %vm959_vm9, %v955_v40  ;;  %v1040_v31 = vld [vmem:[%s2030_s5] sm:$0x1] (!%p1395_p2) }
 0x28c   : > { %v1007_v23 = vsel %vm959_vm9, %v999_v22, 0.0  ;;  %v1011_v47 = vsel %vm959_vm9, %v1001_v33, 0.0  ;;  %v1013_v48 = vsel %vm959_vm9, %v1002_v35, 0.0  ;;  %v971_v25 = vmul.f32 %v1500_v14, %v1887_v26  ;;  %v1045_v33 = vld [vmem:[%s2031_s6] sm:$0x1] (!%p1395_p2) }
 0x28d   : > { %v977_v37 = vadd.f32 %v976_v32, %v975_v34  ;;  %v1008_v38 = vadd.f32 %v1007_v23, %v1006_v20  ;;  %v1003_v49 = vmul.f32 %v969_v44, %v969_v44  ;;  %v1004_v52 = vmul.f32 %v970_v39, %v970_v39 }
 0x28e   : > { %v982_v53 = vsel %vm959_vm9, %v969_v44, 0.0  ;;  %v984_v24 = vsel %vm959_vm9, %v970_v39, 0.0  ;;  %v1005_v56 = vmul.f32 %v971_v25, %v971_v25  ;;  %v986_v61 = vsel %vm959_vm9, %v971_v25, 0.0 }
 0x28f   : > { %v1010_v45 = vadd.f32 %v1009_v41, %v1008_v38  ;;  %v979_v46 = vadd.f32 %v978_v42, %v977_v37  ;;  %v1015_v57 = vsel %vm959_vm9, %v1003_v49, 0.0  ;;  %v1017_v60 = vsel %vm959_vm9, %v1004_v52, 0.0 }
 0x290   : > { %v1019_v63 = vsel %vm959_vm9, %v1005_v56, 0.0 }
 0x291   : > { %v981_v50 = vadd.f32 %v980_v43, %v979_v46  ;;  %v1012_v51 = vadd.f32 %v1011_v47, %v1010_v45 }
 0x293   : > { %v1014_v54 = vadd.f32 %v1013_v48, %v1012_v51  ;;  %v983_v55 = vadd.f32 %v982_v53, %v981_v50 }
 0x295   : > { %v985_v58 = vadd.f32 %v984_v24, %v983_v55  ;;  %v1016_v59 = vadd.f32 %v1015_v57, %v1014_v54 }
 0x297   : > { %v987_v26 = vadd.f32 %v986_v61, %v985_v58  ;;  %v1018_v62 = vadd.f32 %v1017_v60, %v1016_v59 }
 0x299   : > { %v988_v0 = vrot.slane %v987_v26, 4  ;;  %v1020_v1 = vadd.f32 %v1019_v63, %v1018_v62 }
 0x29b   : > { %v989_v2 = vadd.f32 %v988_v0, %v987_v26  ;;  %v1021_v3 = vrot.slane %v1020_v1, 4 }
 0x29d   : > { %v990_v4 = vrot.slane %v989_v2, 2  ;;  %v1022_v5 = vadd.f32 %v1021_v3, %v1020_v1 }
 0x29f   : > { %v991_v6 = vadd.f32 %v990_v4, %v989_v2  ;;  %v1023_v7 = vrot.slane %v1022_v5, 2 }
 0x2a1   : > { %v992_v8 = vrot.slane %v991_v6, 1  ;;  %v1024_v9 = vadd.f32 %v1023_v7, %v1022_v5 }
 0x2a3   : > { %v993_v11 = vadd.f32 %v992_v8, %v991_v6  ;;  %v1025_v12 = vrot.slane %v1024_v9, 1  ;;  %1032 = sbr.rel (%p1395_p2) target bundleno = 715 (0x2cb), region = 84 }
 0x2a5   : > { %v994_v14 = vadd.f32 %v993_v11, %v972_v10  ;;  %v1026_v15 = vadd.f32 %v1025_v12, %v1024_v9 }
 0x2a7   : > { %996 = vst.msk [vmem:[#allocation6] sm:$0x1] %vm995_vm10, %v994_v14  ;;  %v1027_v16 = vadd.f32 %v1026_v15, %v997_v13 }
 0x2a9   : > { %1028 = vst.msk [vmem:[#allocation7] sm:$0x1] %vm995_vm10, %v1027_v16 }
 0x2ae   : > { %v1033_v17 = vld [vmem:[#allocation6] sm:$0x1] }
 0x2af   : > { %v1034_v27 = vmul.f32 0.010416667, %v1033_v17 }
 0x2b0   : > { %v1035_v18 = vld [vmem:[#allocation7] sm:$0x1] }
 0x2b1   : > { %v1036_v28 = vmul.f32 0.010416667, %v1035_v18  ;;  %v1037_v29 = vmul.f32 %v1034_v27, %v1034_v27 }
 0x2b3   : > { %v1038_v30 = vsub.f32 %v1036_v28, %v1037_v29 }
 0x2b5   : > { %v1039_v21 = vmax.f32 %v1038_v30, 0.0 }
 0x2b7   : > { %v1041_v19 = vadd.f32 1e-05, %v1039_v21 }
 0x2b9   : > { %1651 = vrsqrt.f32 %v1041_v19 }
 0x2c3   : > { %v1652_v22 = vpop.eup %1651 }
 0x2c4   : > { %v1043_v32 = vmul.f32 %v1652_v22, %v1040_v31 }
 0x2c6   : > { %1044 = vst.msk [vmem:[#allocation8] sm:$0x1] %vm995_vm10, %v1043_v32  ;;  %v1046_v34 = vmul.f32 %v1043_v32, %v1034_v27 }
 0x2c8   : > { %v1047_v20 = vsub.f32 %v1045_v33, %v1046_v34 }
 0x2ca   : > { %1048 = vst.msk [vmem:[#allocation9] sm:$0x1] %vm995_vm10, %v1047_v20 }
 0x2cb PF: > { %p1396_p4 = scmp.ne.s32.totalorder %s1715_s10, 2 }
 0x2cc   : > { %v1653_v23 = vld [vmem:[%s2032_s7] sm:$0xff] (!%p1396_p4)   ;;  %s1416_s18 = sshll.u32 (!%p1396_p4), %s1711_s30, 5  ;;  %v1654_v35 = vld [vmem:[%s2032_s7 + $0x8] sm:$0xff] (!%p1396_p4)   ;;  %v1655_v36 = vld [vmem:[%s2032_s7 + $0x10] sm:$0xff] (!%p1396_p4)   ;;  %vm1149_vm11 = vcmask (!%p1396_p4), 523264   ;;  %vm1227_vm12 = vcmask (!%p1396_p4), 15360  }
 0x2cd   : > { %1052 = sbr.rel (%p1396_p4) target bundleno = 951 (0x3b7), region = 88  ;;  %1501 = vmatprep.subr.bf16.mxu0 (!%p1396_p4), %v1653_v23  ;;  %1549 = vmatprep.subr.bf16.mxu1 (!%p1396_p4), %v1653_v23  ;;  %s1055_s10 = scalar_lea.vmem (!%p1396_p4), [#allocation11], %s1416_s18  ;;  %v1399_v38 = vld [vmem:[#allocation8] ss:$0 sm:$0xff] (!%p1396_p4)  ;;  %v1656_v52 = vld [vmem:[%s2032_s7 + $0x18] sm:$0xff] (!%p1396_p4)  }
 0x2ce   : > { %1502 = vmatpush3.bf16.msra.mxu0 (!%p1396_p4), %v1653_v23  ;;  %1553 = vmatpush3.bf16.msra.mxu1 (!%p1396_p4), %v1653_v23  ;;  %v1056_v37 = vld [vmem:[%s1055_s10] sm:$0xff] (!%p1396_p4)  ;;  %v1058_v41 = vld [vmem:[%s1055_s10 + $0x10] sm:$0xff] (!%p1396_p4)  ;;  %v1057_v42 = vld [vmem:[%s1055_s10 + $0x8] sm:$0xff] (!%p1396_p4) }
 0x2cf   : > { %1503 = vmatprep.subr.bf16.mxu0 (!%p1396_p4), %v1654_v35  ;;  %1550 = vmatprep.subr.bf16.mxu1 (!%p1396_p4), %v1654_v35  ;;  %v1060_v39 = vunpack.c.l.bf16 (!%p1396_p4), %v1056_v37  ;;  %v1061_v40 = vunpack.c.h.bf16 (!%p1396_p4), %v1056_v37  ;;  %v1059_v43 = vld [vmem:[%s1055_s10 + $0x18] sm:$0xff] (!%p1396_p4)  ;;  %v1064_v45 = vunpack.c.l.bf16 (!%p1396_p4), %v1058_v41  ;;  %v1065_v46 = vunpack.c.h.bf16 (!%p1396_p4), %v1058_v41  ;;  %v1401_v13 = vld [vmem:[%s2033_s8] ss:$0 sm:$0xff] (!%p1396_p4) }
 0x2d0   : > { %v1062_v47 = vunpack.c.l.bf16 (!%p1396_p4), %v1057_v42  ;;  %v1063_v48 = vunpack.c.h.bf16 (!%p1396_p4), %v1057_v42  ;;  %v1066_v50 = vunpack.c.l.bf16 (!%p1396_p4), %v1059_v43  ;;  %v1067_v51 = vunpack.c.h.bf16 (!%p1396_p4), %v1059_v43 }
 0x2d1   : > { %v1400_v44 = vld [vmem:[#allocation9] ss:$0 sm:$0xff] (!%p1396_p4)  ;;  %v1075_v25 = vmul.f32 (!%p1396_p4), %v1399_v38, %v1060_v39  ;;  %v1076_v49 = vmul.f32 (!%p1396_p4), %v1399_v38, %v1061_v40  ;;  %v1079_v53 = vmul.f32 (!%p1396_p4), %v1399_v38, %v1064_v45  ;;  %v1080_v54 = vmul.f32 (!%p1396_p4), %v1399_v38, %v1065_v46 }
 0x2d2   : > { %1504 = vmatpush3.bf16.msra.mxu0 (!%p1396_p4), %v1654_v35  ;;  %1554 = vmatpush3.bf16.msra.mxu1 (!%p1396_p4), %v1654_v35  ;;  %v1077_v55 = vmul.f32 (!%p1396_p4), %v1399_v38, %v1062_v47  ;;  %v1078_v57 = vmul.f32 (!%p1396_p4), %v1399_v38, %v1063_v48  ;;  %v1081_v58 = vmul.f32 (!%p1396_p4), %v1399_v38, %v1066_v50 }
 0x2d3   : > { %1505 = vmatprep.subr.bf16.mxu0 (!%p1396_p4), %v1655_v36  ;;  %1551 = vmatprep.subr.bf16.mxu1 (!%p1396_p4), %v1655_v36  ;;  %v1090_v24 = vadd.f32 (!%p1396_p4), %v1400_v44, %v1075_v25  ;;  %v1091_v56 = vadd.f32 (!%p1396_p4), %v1400_v44, %v1076_v49  ;;  %v1094_v59 = vadd.f32 (!%p1396_p4), %v1400_v44, %v1079_v53 }
 0x2d4   : > { %v1095_v60 = vadd.f32 %v1400_v44, %v1080_v54  ;;  %v1092_v61 = vadd.f32 %v1400_v44, %v1077_v55  ;;  %v1082_v26 = vmul.f32 %v1399_v38, %v1067_v51  ;;  %v1093_v0 = vadd.f32 %v1400_v44, %v1078_v57 }
 0x2d5   : > { %v1098_v62 = vmax.f32 %v1090_v24, 0.0  ;;  %v1099_v63 = vmax.f32 %v1091_v56, 0.0  ;;  %v1096_v1 = vadd.f32 %v1400_v44, %v1081_v58  ;;  %v1102_v2 = vmax.f32 %v1094_v59, 0.0 }
 0x2d6   : > { %1506 = vmatpush3.bf16.msra.mxu0 %v1655_v36  ;;  %1555 = vmatpush3.bf16.msra.mxu1 %v1655_v36  ;;  %v1103_v3 = vmax.f32 %v1095_v60, 0.0  ;;  %v1100_v4 = vmax.f32 %v1092_v61, 0.0  ;;  %v1097_v5 = vadd.f32 %v1400_v44, %v1082_v26  ;;  %v1101_v7 = vmax.f32 %v1093_v0, 0.0 }
 0x2d7   : > { %1507 = vmatprep.subr.bf16.mxu0 %v1656_v52  ;;  %1552 = vmatprep.subr.bf16.mxu1 %v1656_v52  ;;  %v1106_v6 = vpack.c.bf16 %v1099_v63, %v1098_v62  ;;  %v1104_v8 = vmax.f32 %v1096_v1, 0.0 }
 0x2d8   : > { %v1108_v9 = vpack.c.bf16 %v1103_v3, %v1102_v2  ;;  %v1105_v10 = vmax.f32 %v1097_v5, 0.0  ;;  %v1107_v11 = vpack.c.bf16 %v1101_v7, %v1100_v4 }
 0x2d9   : > { %1509 = vmatprep.mubr.msk.bf16.mxu0 %vm1149_vm11, %v1106_v6 }
 0x2da   : > { %1508 = vmatpush3.bf16.msra.mxu0 %v1656_v52  ;;  %1556 = vmatpush3.bf16.msra.mxu1 %v1656_v52  ;;  %v1109_v12 = vpack.c.bf16 %v1105_v10, %v1104_v8 }
 0x2db   : > { %1513 = vmatprep.mubr.msk.bf16.mxu1 %vm1149_vm11, %v1108_v9 }
 0x2dd   : > { %1510 = vmatmul.mubr.msk.bf16.vlgmr.msra.gmra.mrb[0].mxu0 %vm1149_vm11, %v1107_v11  ;;  %1514 = vmatmul.mubr.msk.bf16.vlgmr.msra.gmra.mrb[0].mxu1 %vm1149_vm11, %v1109_v12 }
 0x3b0   : > { %v1511_v14 = vpop.f32.mrb[0].mxu0  ;;  %v1515_v15 = vpop.f32.mrb[0].mxu1 }
 0x3b1   : > { %v1205_v16 = vadd.f32 %v1511_v14, %v1401_v13  ;;  %v1221_v17 = vadd.f32 %v1515_v15, %v1401_v13  ;;  %v1196_v18 = vpop.f32.mrb[1].mxu0  ;;  %v1212_v27 = vpop.f32.mrb[1].mxu1 }
 0x3b2   : > { %v1197_v28 = vadd.f32 %v1401_v13, %v1196_v18  ;;  %v1213_v29 = vadd.f32 %v1401_v13, %v1212_v27  ;;  %v1512_v30 = vpop.f32.mrb[2].mxu0  ;;  %v1516_v21 = vpop.f32.mrb[2].mxu1 }
 0x3b3   : > { %1230 = vst.msk [vmem:[%s1881_s22 + $0x10] sm:$0xff] %vm1227_vm12, %v1205_v16  ;;  %1234 = vst.msk [vmem:[%s1881_s22 + $0x30] sm:$0xff] %vm1227_vm12, %v1221_v17  ;;  %v1208_v19 = vadd.f32 %v1512_v30, %v1401_v13  ;;  %v1224_v31 = vadd.f32 %v1516_v21, %v1401_v13  ;;  %v1199_v22 = vpop.f32.mrb[3].mxu0  ;;  %v1215_v32 = vpop.f32.mrb[3].mxu1 }
 0x3b4   : > { %1228 = vst.msk [vmem:[%s1881_s22] sm:$0xff] %vm1227_vm12, %v1197_v28  ;;  %1232 = vst.msk [vmem:[%s1881_s22 + $0x20] sm:$0xff] %vm1227_vm12, %v1213_v29  ;;  %v1200_v33 = vadd.f32 %v1401_v13, %v1199_v22  ;;  %v1216_v34 = vadd.f32 %v1401_v13, %v1215_v32 }
 0x3b5   : > { %1231 = vst.msk [vmem:[%s1881_s22 + $0x18] sm:$0xff] %vm1227_vm12, %v1208_v19  ;;  %1235 = vst.msk [vmem:[%s1881_s22 + $0x38] sm:$0xff] %vm1227_vm12, %v1224_v31 }
 0x3b6   : > { %1229 = vst.msk [vmem:[%s1881_s22 + $0x8] sm:$0xff] %vm1227_vm12, %v1200_v33  ;;  %1233 = vst.msk [vmem:[%s1881_s22 + $0x28] sm:$0xff] %vm1227_vm12, %v1216_v34 }
 0x3b7 PF: > { %s20_s13 = sadd.s32 1, %s1727_s13   ;;  %s2043_s30 = smov %s1719_s11 }
 0x3b8   : > { %p17_p6 = scmp.ge.s32.totalorder %s20_s13, 8   ;;  %s2044_s10 = smov %s1723_s12 }
 0x3b9   : > { %s2045_s11 = smov %s2048_s15  ;;  %s2046_s12 = smov %s2052_s16 }
 0x3ba   :  { %19 = sbr.rel (!%p17_p6) target bundleno = 3 (0x3), region = 123 }
 0x3c1   :  { %1264 = vsyncpa [#allocation13], 1 }
 0x3c2   :  { %1266 = vsyncpa [#allocation13 + $0x1], 1 }

</bundles_post_ra>
